<compile_context>
chip_gen: v6e
topology: v6e:2x2x1
jax: 0.10.0
libtpu: 0.0.40
codegen_flags: <defaults>
</compile_context>

<pallas_src>
import jax
import jax.numpy as jnp
from jax.experimental import pallas as pl
from jax.experimental.pallas import tpu as pltpu


def _round_up(n, m):
    return ((n + m - 1) // m) * m


def actor_critic_kernel(x_ref, w1_ref, b1_ref, w2_ref, b2_ref, out_ref):
    """Fused critic+actor forward for one batch tile.

    w1 = [wc1 | wa1]                        : (num_inputs, 2*hidden)
    w2 = block-diag(wc2, wa2), 128-lane pad : (2*hidden, NP2)
    out lane 0             -> critic value
    out lanes 1..NO        -> tanh(actor logits) = mu
    out lanes >= 1 + NO    -> exact zeros (tanh(0) == 0), sliced off in wrapper
    """
    x = x_ref[...]                                                    # (TB, num_inputs) f32

    # Layer 1 (both heads in one MXU pass) + ReLU.  All math stays f32.
    h = jnp.dot(x, w1_ref[...], preferred_element_type=jnp.float32) + b1_ref[...]
    h = jnp.maximum(h, 0.0)                                           # (TB, 2*hidden)

    # Layer 2 (block-diagonal, lane-dense output slab).
    z = jnp.dot(h, w2_ref[...], preferred_element_type=jnp.float32) + b2_ref[...]

    # Only the value lane (0) passes through; tanh on everything else is
    # correct because padded lanes are exactly zero and tanh(0) == 0.
    lane = jax.lax.broadcasted_iota(jnp.int32, z.shape, dimension=1)
    out = jnp.where(lane == 0, z, jnp.tanh(z))

    out_ref[...] = out.astype(out_ref.dtype)                          # cast only at the store


def pack_params(params):
    """Fuse critic/actor layer weights into two lane-dense slabs."""
    hidden = params["wc1"].shape[1]
    num_outputs = params["wa2"].shape[1]
    n2 = 1 + num_outputs
    np2 = _round_up(max(n2, 128), 128)        # lane-dense output width (multiple of 128)

    w1 = jnp.concatenate([params["wc1"], params["wa1"]], axis=1)      # (in, 2H)
    b1 = jnp.concatenate([params["bc1"], params["ba1"]], axis=1)      # (1, 2H)

    w2 = jnp.zeros((2 * hidden, np2), jnp.float32)
    w2 = w2.at[:hidden, 0:1].set(params["wc2"])                       # critic head
    w2 = w2.at[hidden:, 1:n2].set(params["wa2"])                      # actor head
    b2 = jnp.zeros((1, np2), jnp.float32)
    b2 = b2.at[:, 0:1].set(params["bc2"])
    b2 = b2.at[:, 1:n2].set(params["ba2"])
    return w1, b1, w2, b2, num_outputs, np2


def _batch_dim_semantics():
    # CORE_PARALLEL actually shards the batch grid axis across the 2 TensorCores
    # on v7x (plain "parallel" vs "arbitrary" is a measured near-no-op).  On
    # single-TC v5e/v6e we keep the known-good "parallel".
    try:
        kind = jax.devices()[0].device_kind.lower()
    except Exception:  # pragma: no cover - defensive
        kind = ""
    if "v7" in kind or "7x" in kind:
        return (pltpu.CORE_PARALLEL,)
    return ("parallel",)


def actor_critic_forward(x, params, *, block_b=2048, out_dtype=jnp.bfloat16):
    """Returns (mu, std, value) — the parameters of Normal(mu, std) plus value."""
    B, num_inputs = x.shape
    w1, b1, w2, b2, num_outputs, np2 = pack_params(params)
    two_h = w1.shape[1]

    # Batch tile: multiple of 16 sublanes (bf16 output tile is (16,128)), capped
    # at block_b so large batches get a pipelined grid with VMEM-resident
    # weights.  tb=2048 => ~1.7 MiB of double-buffered tiles: fits every chip.
    tb = min(block_b, _round_up(B, 16))
    grid = (pl.cdiv(B, tb),)   # ragged last block is masked by Pallas: no jnp.pad copy of x

    out_itemsize = jnp.dtype(out_dtype).itemsize
    cost = pl.CostEstimate(
        flops=2 * B * (num_inputs * two_h + two_h * np2),
        transcendentals=B * np2,                                   # tanh lanes
        bytes_accessed=(B * num_inputs * 4 + B * np2 * out_itemsize
                        + (w1.size + b1.size + w2.size + b2.size) * 4),
    )

    out = pl.pallas_call(
        actor_critic_kernel,
        out_shape=jax.ShapeDtypeStruct((B, np2), out_dtype),
        grid=grid,
        in_specs=[
            pl.BlockSpec((tb, num_inputs), lambda i: (i, 0)),      # x tiled over batch
            # Constant index_map => weights stay VMEM-resident, no per-step re-DMA.
            pl.BlockSpec(w1.shape, lambda i: (0, 0)),
            pl.BlockSpec(b1.shape, lambda i: (0, 0)),
            pl.BlockSpec(w2.shape, lambda i: (0, 0)),
            pl.BlockSpec(b2.shape, lambda i: (0, 0)),
        ],
        out_specs=pl.BlockSpec((tb, np2), lambda i: (i, 0)),
        compiler_params=pltpu.CompilerParams(
            dimension_semantics=_batch_dim_semantics(),
        ),
        cost_estimate=cost,
    )(x, w1, b1, w2, b2)

    value = out[:, 0:1].astype(jnp.float32)
    mu = out[:, 1:1 + num_outputs].astype(jnp.float32)
    # std does not depend on x: compute/broadcast in the wrapper, not the kernel.
    std = jnp.broadcast_to(jnp.exp(params["log_std"]), (B, num_outputs))
    return mu, std, value


def init_params(key, num_inputs, num_outputs, hidden_size, std=0.0):
    """Matches the PyTorch init_weights: Linear.weight ~ N(0, 0.1),
    Linear.bias = 0.1, log_std = std * ones.  Weights stored as (in, out)."""
    ks = jax.random.split(key, 4)

    def lin_w(k, fan_in, fan_out):
        return 0.1 * jax.random.normal(k, (fan_in, fan_out), dtype=jnp.float32)

    return {
        # critic
        "wc1": lin_w(ks[0], num_inputs, hidden_size),
        "bc1": jnp.full((1, hidden_size), 0.1, dtype=jnp.float32),
        "wc2": lin_w(ks[1], hidden_size, 1),
        "bc2": jnp.full((1, 1), 0.1, dtype=jnp.float32),
        # actor
        "wa1": lin_w(ks[2], num_inputs, hidden_size),
        "ba1": jnp.full((1, hidden_size), 0.1, dtype=jnp.float32),
        "wa2": lin_w(ks[3], hidden_size, num_outputs),
        "ba2": jnp.full((1, num_outputs), 0.1, dtype=jnp.float32),
        # log_std parameter (1, num_outputs) * std
        "log_std": jnp.full((1, num_outputs), std, dtype=jnp.float32),
    }


if __name__ == "__main__":
    key = jax.random.PRNGKey(0)
    k_param, k_x = jax.random.split(key)

    batch = 40              # deliberately not a multiple of 16: exercises the ragged block path
    num_inputs = 32
    num_outputs = 8
    hidden_size = 32

    params = init_params(k_param, num_inputs, num_outputs, hidden_size, std=0.0)
    x = jax.random.normal(k_x, (batch, num_inputs), dtype=jnp.float32)

    mu, std, value = actor_critic_forward(x, params)
    jax.block_until_ready((mu, std, value))

    # plain-JAX reference (same math as the PyTorch module's forward)
    h_c = jnp.maximum(x @ params["wc1"] + params["bc1"], 0.0)
    value_ref = h_c @ params["wc2"] + params["bc2"]
    h_a = jnp.maximum(x @ params["wa1"] + params["ba1"], 0.0)
    mu_ref = jnp.tanh(h_a @ params["wa2"] + params["ba2"])
    std_ref = jnp.broadcast_to(jnp.exp(params["log_std"]), mu_ref.shape)

    assert mu.shape == (batch, num_outputs)
    assert std.shape == (batch, num_outputs)
    assert value.shape == (batch, 1)
    # bf16 output store: |err| <= ~4e-3 for tanh-bounded mu and O(1) value.
    assert jnp.allclose(mu, mu_ref, atol=1e-2, rtol=1e-2)
    assert jnp.allclose(value, value_ref, atol=1e-2, rtol=1e-2)
    assert jnp.allclose(std, std_ref, atol=1e-5)
    assert bool(jnp.all(jnp.isfinite(mu))) and bool(jnp.all(jnp.isfinite(value)))

    # TODO(synk): torch.distributions.Normal has no Pallas equivalent; (mu, std)
    # fully parameterize it (sampling/log_prob can be done in JAX downstream).
    print("KERNEL_OK")
</pallas_src>

<mosaic_0001>
module attributes {stable_mosaic.version = 11 : i64} {
  func.func @actor_critic_kernel(%arg0: i32, %arg1: memref<48x32xf32, #tpu.memory_space<vmem>>, %arg2: memref<32x64xf32, #tpu.memory_space<vmem>>, %arg3: memref<1x64xf32, #tpu.memory_space<vmem>>, %arg4: memref<64x128xf32, #tpu.memory_space<vmem>>, %arg5: memref<1x128xf32, #tpu.memory_space<vmem>>, %arg6: memref<48x128xbf16, #tpu.memory_space<vmem>>) attributes {dimension_semantics = [#tpu.dimension_semantics<parallel>], iteration_bounds = array<i64: 1>, scalar_prefetch = 0 : i64, scratch_operands = 0 : i64, tpu.core_type = #tpu.core_type<tc>, window_params = [{transform_indices = @transform_0, window_bounds = array<i64: 48, 32>}, {pipeline_mode = #tpu.pipeline_mode<synchronous>, transform_indices = @transform_1, window_bounds = array<i64: 32, 64>}, {pipeline_mode = #tpu.pipeline_mode<synchronous>, transform_indices = @transform_2, window_bounds = array<i64: 1, 64>}, {pipeline_mode = #tpu.pipeline_mode<synchronous>, transform_indices = @transform_3, window_bounds = array<i64: 64, 128>}, {pipeline_mode = #tpu.pipeline_mode<synchronous>, transform_indices = @transform_4, window_bounds = array<i64: 1, 128>}, {transform_indices = @transform_5, window_bounds = array<i64: 48, 128>}]} {
    %c0 = arith.constant 0 : index
    %c0_0 = arith.constant 0 : index
    %0 = vector.load %arg1[%c0, %c0_0] : memref<48x32xf32, #tpu.memory_space<vmem>>, vector<48x32xf32>
    %c0_1 = arith.constant 0 : index
    %c0_2 = arith.constant 0 : index
    %1 = vector.load %arg2[%c0_1, %c0_2] : memref<32x64xf32, #tpu.memory_space<vmem>>, vector<32x64xf32>
    %cst = arith.constant dense<0.000000e+00> : vector<48x64xf32>
    %2 = tpu.matmul %0, %1, %cst {dimension_numbers = #tpu.dot_dimension_numbers<[1], [0], [0], [1], [0, 0, 1, 1], [], []>} : vector<48x32xf32>, vector<32x64xf32>, vector<48x64xf32> -> vector<48x64xf32>
    %c0_3 = arith.constant 0 : index
    %c0_4 = arith.constant 0 : index
    %3 = vector.load %arg3[%c0_3, %c0_4] : memref<1x64xf32, #tpu.memory_space<vmem>>, vector<1x64xf32>
    %4 = vector.broadcast %3 : vector<1x64xf32> to vector<48x64xf32>
    %5 = arith.addf %2, %4 : vector<48x64xf32>
    %cst_5 = arith.constant 0.000000e+00 : f32
    %6 = vector.broadcast %cst_5 : f32 to vector<48x64xf32>
    %7 = arith.maximumf %5, %6 : vector<48x64xf32>
    %c0_6 = arith.constant 0 : index
    %c0_7 = arith.constant 0 : index
    %8 = vector.load %arg4[%c0_6, %c0_7] : memref<64x128xf32, #tpu.memory_space<vmem>>, vector<64x128xf32>
    %cst_8 = arith.constant dense<0.000000e+00> : vector<48x128xf32>
    %9 = tpu.matmul %7, %8, %cst_8 {dimension_numbers = #tpu.dot_dimension_numbers<[1], [0], [0], [1], [0, 0, 1, 1], [], []>} : vector<48x64xf32>, vector<64x128xf32>, vector<48x128xf32> -> vector<48x128xf32>
    %c0_9 = arith.constant 0 : index
    %c0_10 = arith.constant 0 : index
    %10 = vector.load %arg5[%c0_9, %c0_10] : memref<1x128xf32, #tpu.memory_space<vmem>>, vector<1x128xf32>
    %11 = vector.broadcast %10 : vector<1x128xf32> to vector<48x128xf32>
    %12 = arith.addf %9, %11 : vector<48x128xf32>
    %13 = tpu.iota {dimensions = array<i32: 1>} : vector<48x128xi32>
    %c0_i32 = arith.constant 0 : i32
    %14 = vector.broadcast %c0_i32 : i32 to vector<48x128xi32>
    %15 = arith.cmpi eq, %13, %14 : vector<48x128xi32>
    %16 = math.tanh %12 : vector<48x128xf32>
    %17 = arith.select %15, %12, %16 : vector<48x128xi1>, vector<48x128xf32>
    %18 = arith.truncf %17 : vector<48x128xf32> to vector<48x128xbf16>
    %c0_11 = arith.constant 0 : index
    %c0_12 = arith.constant 0 : index
    %19 = vector.load %arg6[%c0_11, %c0_12] : memref<48x128xbf16, #tpu.memory_space<vmem>>, vector<48x128xbf16>
    tpu.vector_store %arg6[%c0_11, %c0_12], %18 {strides = array<i32>} : memref<48x128xbf16, #tpu.memory_space<vmem>>, vector<48x128xbf16>,
    return
  }
  func.func @transform_0(%arg0: i32) -> (i32, i32) {
    %c0_i32 = arith.constant 0 : i32
    %c0_i32_0 = arith.constant 0 : i32
    return %arg0, %c0_i32 : i32, i32
  }
  func.func @transform_1(%arg0: i32) -> (i32, i32) {
    %c0_i32 = arith.constant 0 : i32
    %c0_i32_0 = arith.constant 0 : i32
    %c0_i32_1 = arith.constant 0 : i32
    return %c0_i32, %c0_i32_0 : i32, i32
  }
  func.func @transform_2(%arg0: i32) -> (i32, i32) {
    %c0_i32 = arith.constant 0 : i32
    %c0_i32_0 = arith.constant 0 : i32
    %c0_i32_1 = arith.constant 0 : i32
    return %c0_i32, %c0_i32_0 : i32, i32
  }
  func.func @transform_3(%arg0: i32) -> (i32, i32) {
    %c0_i32 = arith.constant 0 : i32
    %c0_i32_0 = arith.constant 0 : i32
    %c0_i32_1 = arith.constant 0 : i32
    return %c0_i32, %c0_i32_0 : i32, i32
  }
  func.func @transform_4(%arg0: i32) -> (i32, i32) {
    %c0_i32 = arith.constant 0 : i32
    %c0_i32_0 = arith.constant 0 : i32
    %c0_i32_1 = arith.constant 0 : i32
    return %c0_i32, %c0_i32_0 : i32, i32
  }
  func.func @transform_5(%arg0: i32) -> (i32, i32) {
    %c0_i32 = arith.constant 0 : i32
    %c0_i32_0 = arith.constant 0 : i32
    return %arg0, %c0_i32 : i32, i32
  }
}

</mosaic_0001>

<bundles_post_ra>
// kernel: tpu_custom_call.1
= control target key start
LH: loop header
LB: loop body
LE: loop exit
PB: predicated region body
PF: predicated region fallthrough
CT: control target
= control target key end

     0   :  { %10 = vsyncpa [#allocation3], 0  ;;  %s636_s0 = inlined_call_operand.vmem [shape: f32[40,32], index: 0, kind: input, shape index: {}]   ;;  %s637_s1 = inlined_call_operand.hbm [shape: f32[32,64], index: 1, kind: input, shape index: {}]   ;;  %s638_s2 = inlined_call_operand.vmem [shape: f32[1,64], index: 2, kind: input, shape index: {}]   ;;  %s639_s3 = inlined_call_operand.vmem [shape: f32[64,128], index: 3, kind: input, shape index: {}]   ;;  %s640_s4 = inlined_call_operand.vmem [shape: f32[1,128], index: 4, kind: input, shape index: {}]   ;;  %s641_s5 = inlined_call_operand.hbm [shape: bf16[40,128], index: 5, kind: output, shape index: {}]  }
   0x1   :  { %11 = vsyncpa [#allocation4], 0  ;;  %s534_s18 = smov [#allocation2]  }
   0x2   :  { %s19_s19 = sshll.u32 %s534_s18, 4  ;;  %s20_s19 = int_to_ptr.vmem [resolvable:$true] %s19_s19 }
   0x3   :  { %s498_s20 = scalar_lea.vmem %s20_s19, 512  ;;  %p503_p1 = scmp.lt.s32.totalorder %s20_s19, %s20_s19 }
   0x4   :  { %p499_p0 = scmp.ne.s32.totalorder %s20_s19, %s498_s20  ;;  %p504_p2 = scmp.lt.s32.totalorder %s498_s20, %s498_s20 }
   0x6   :  { %p505_p3 = por %p504_p2, %p503_p1 }
   0x8   :  { %p506_p4 = pnand %p505_p3, %p499_p0 }
   0xa   :  { %509 = shalt.err (!%p506_p4)
}
   0xb   :  { %s535_s21 = smov 128   ;;  %s536_s22 = smov 8  }
   0xc   :  { %25 = dma.hbm_to_vmem [thread:$0]  %s637_s1, 512, %s20_s19, [#allocation3], %s535_s21, %s535_s21, %s536_s22  }
   0xd   :  { %530 = dma.done.wait [#allocation3], 512  }
   0xe   :  { %531 = vsyncadd [#allocation3], 4294966784  ;;  %vm52_vm0 = vcmask 261120   ;;  %v44_v0 = vld [vmem:[#allocation2 + $0x18] sm:$0xff]  ;;  %v43_v1 = vld [vmem:[#allocation2 + $0x10] sm:$0xff]  ;;  %vm187_vm1 = vcmask 523264   ;;  %v301_v46 = vlaneseq }
   0xf   :  { %430 = vmatprep.subr.mxu0 %v44_v0  ;;  %v35_v2 = vld [vmem:[%s636_s0] sm:$0xff]  ;;  %v42_v3 = vld [vmem:[#allocation2 + $0x8] sm:$0xff]  ;;  %v179_v4 = vld [vmem:[%s639_s3 + $0x38] sm:$0xff] }
  0x10   :  { %431 = vmatpush3.msra.mxu0 %v44_v0  ;;  %438 = vmatprep.mubr.msk.f32.mxu0 %vm52_vm0, %v35_v2  ;;  %v178_v5 = vld [vmem:[%s639_s3 + $0x30] sm:$0xff]  ;;  %v41_v6 = vld [vmem:[#allocation2] sm:$0xff]  ;;  %v177_v7 = vld [vmem:[%s639_s3 + $0x28] sm:$0xff]  ;;  %v302_v51 = vand.u32 127, %v301_v46 }
  0x11   :  { %432 = vmatprep.subr.mxu0 %v43_v1  ;;  %447 = vmatprep.subr.mxu1 %v179_v4  ;;  %v36_v8 = vld [vmem:[%s636_s0 + $0x8] sm:$0xff]  ;;  %v37_v9 = vld [vmem:[%s636_s0 + $0x10] sm:$0xff]  ;;  %v176_v10 = vld [vmem:[%s639_s3 + $0x20] sm:$0xff] }
  0x12   :  { %433 = vmatpush3.msra.mxu0 %v43_v1  ;;  %448 = vmatpush3.msra.mxu1 %v179_v4  ;;  %v38_v11 = vld [vmem:[%s636_s0 + $0x18] sm:$0xff]  ;;  %v39_v12 = vld [vmem:[%s636_s0 + $0x20] sm:$0xff]  ;;  %v40_v13 = vld [vmem:[%s636_s0 + $0x28] sm:$0xff]  ;;  %vm303_vm2 = vcmp.eq.s32.totalorder %v302_v51, 0 }
  0x13   :  { %434 = vmatprep.subr.mxu0 %v42_v3  ;;  %449 = vmatprep.subr.mxu1 %v178_v5  ;;  %v175_v14 = vld [vmem:[%s639_s3 + $0x18] sm:$0xff]  ;;  %v174_v15 = vld [vmem:[%s639_s3 + $0x10] sm:$0xff]  ;;  %v173_v16 = vld [vmem:[%s639_s3 + $0x8] sm:$0xff] }
  0x14   :  { %435 = vmatpush3.msra.mxu0 %v42_v3  ;;  %450 = vmatpush3.msra.mxu1 %v178_v5  ;;  %v172_v17 = vld [vmem:[%s639_s3] sm:$0xff] }
  0x15   :  { %436 = vmatprep.subr.mxu0 %v41_v6  ;;  %451 = vmatprep.subr.mxu1 %v177_v7  ;;  %v363_v18 = vld [vmem:[%s638_s2] ss:$0 sm:$0xff] }
  0x16   :  { %437 = vmatpush3.msra.mxu0 %v41_v6  ;;  %452 = vmatpush3.msra.mxu1 %v177_v7  ;;  %v370_v37 = vld [vmem:[%s640_s4] ss:$0 sm:$0xff] }
  0x17   :  { %439 = vmatmul.mubr.msk.f32.vlgmr.msra.gmra.mxu0 %vm52_vm0, %v36_v8  ;;  %453 = vmatprep.subr.mxu1 %v176_v10 }
  0x18   :  { %441 = vmatprep.mubr.msk.f32.mxu0 %vm52_vm0, %v37_v9  ;;  %454 = vmatpush3.msra.mxu1 %v176_v10 }
  0x19   :  { %455 = vmatprep.subr.mxu1 %v175_v14 }
  0x1a   :  { %456 = vmatpush3.msra.mxu1 %v175_v14 }
  0x1b   :  { %442 = vmatmul.mubr.msk.f32.gmra.mxu0 %vm52_vm0, %v38_v11  ;;  %457 = vmatprep.subr.mxu1 %v174_v15 }
  0x1c   :  { %444 = vmatprep.mubr.msk.f32.mxu0 %vm52_vm0, %v39_v12  ;;  %458 = vmatpush3.msra.mxu1 %v174_v15 }
  0x1d   :  { %459 = vmatprep.subr.mxu1 %v173_v16 }
  0x1e   :  { %460 = vmatpush3.msra.mxu1 %v173_v16 }
  0x1f   :  { %445 = vmatmul.mubr.msk.f32.gmra.mxu0 %vm52_vm0, %v40_v13  ;;  %461 = vmatprep.subr.mxu1 %v172_v17 }
  0x20   :  { %462 = vmatpush3.msra.mxu1 %v172_v17 }
  0xd7   :  { %v440_v19 = vpop.f32.mrf.mxu0 }
  0xd8   :  { %v143_v20 = vadd.f32 %v440_v19, %v363_v18 }
  0xd9   :  { %v137_v21 = vpop.f32.mrf.mxu0 }
  0xda   :  { %v138_v22 = vadd.f32 %v363_v18, %v137_v21  ;;  %v167_v25 = vmax.f32 %v143_v20, 0.0 }
  0xdb   :  { %v443_v23 = vpop.f32.mrf.mxu0 }
  0xdc   :  { %v166_v24 = vmax.f32 %v138_v22, 0.0  ;;  %v153_v26 = vadd.f32 %v443_v23, %v363_v18 }
  0xdd   :  { %v147_v27 = vpop.f32.mrf.mxu0 }
  0xde   :  { %v148_v28 = vadd.f32 %v363_v18, %v147_v27  ;;  %463 = vmatprep.mubr.msk.f32.mxu1 %vm187_vm1, %v166_v24  ;;  %v169_v31 = vmax.f32 %v153_v26, 0.0 }
  0xdf   :  { %v446_v29 = vpop.f32.mrf.mxu0  ;;  %464 = vmatmul.mubr.msk.f32.vlgmr.msra.gmra.mxu1 %vm187_vm1, %v167_v25 }
  0xe0   :  { %v168_v30 = vmax.f32 %v148_v28, 0.0  ;;  %v163_v32 = vadd.f32 %v446_v29, %v363_v18 }
  0xe1   :  { %v157_v33 = vpop.f32.mrf.mxu0 }
  0xe2   :  { %v158_v34 = vadd.f32 %v363_v18, %v157_v33  ;;  %466 = vmatprep.mubr.msk.f32.mxu1 %vm187_vm1, %v168_v30  ;;  %v171_v36 = vmax.f32 %v163_v32, 0.0 }
  0xe3   :  { %467 = vmatmul.mubr.msk.f32.gmra.mxu1 %vm187_vm1, %v169_v31 }
  0xe4   :  { %v170_v35 = vmax.f32 %v158_v34, 0.0 }
  0xe6   :  { %469 = vmatprep.mubr.msk.f32.mxu1 %vm187_vm1, %v170_v35 }
  0xe7   :  { %470 = vmatmul.mubr.msk.f32.gmra.mxu1 %vm187_vm1, %v171_v36 }
 0x19f   :  { %v465_v38 = vpop.f32.mrf.mxu1 }
 0x1a0   :  { %v278_v39 = vadd.f32 %v465_v38, %v370_v37 }
 0x1a1   :  { %v272_v40 = vpop.f32.mrf.mxu1 }
 0x1a2   :  { %478 = vtanh.f32 %v278_v39  ;;  %v273_v41 = vadd.f32 %v370_v37, %v272_v40 }
 0x1a3   :  { %v468_v42 = vpop.f32.mrf.mxu1 }
 0x1a4   :  { %480 = vtanh.f32 %v273_v41  ;;  %v288_v43 = vadd.f32 %v468_v42, %v370_v37 }
 0x1a5   :  { %v282_v44 = vpop.f32.mrf.mxu1 }
 0x1a6   :  { %482 = vtanh.f32 %v288_v43  ;;  %v283_v45 = vadd.f32 %v370_v37, %v282_v44 }
 0x1a7   :  { %v471_v47 = vpop.f32.mrf.mxu1 }
 0x1a8   :  { %484 = vtanh.f32 %v283_v45  ;;  %v298_v48 = vadd.f32 %v471_v47, %v370_v37 }
 0x1a9   :  { %v292_v49 = vpop.f32.mrf.mxu1 }
 0x1aa   :  { %486 = vtanh.f32 %v298_v48  ;;  %v293_v50 = vadd.f32 %v370_v37, %v292_v49 }
 0x1ac   :  { %488 = vtanh.f32 %v293_v50 }
 0x1af   :  { %v479_v52 = vpop.eup %478 }
 0x1b0   :  { %v311_v54 = vsel %vm303_vm2, %v278_v39, %v479_v52 }
 0x1b1   :  { %v481_v53 = vpop.eup %480 }
 0x1b2   :  { %v310_v55 = vsel %vm303_vm2, %v273_v41, %v481_v53 }
 0x1b3   :  { %v483_v56 = vpop.eup %482  ;;  %v392_v57 = vpack.c.bf16 %v311_v54, %v310_v55 }
 0x1b4   :  { %v313_v59 = vsel %vm303_vm2, %v288_v43, %v483_v56 }
 0x1b5   :  { %v485_v58 = vpop.eup %484  ;;  %393 = vst [vmem:[#allocation5] sm:$0xff] %v392_v57  }
 0x1b6   :  { %v312_v60 = vsel %vm303_vm2, %v283_v45, %v485_v58 }
 0x1b7   :  { %v487_v61 = vpop.eup %486  ;;  %v397_v62 = vpack.c.bf16 %v313_v59, %v312_v60 }
 0x1b8   :  { %v315_v0 = vsel %vm303_vm2, %v298_v48, %v487_v61 }
 0x1b9   :  { %v489_v63 = vpop.eup %488  ;;  %404 = vst [vmem:[#allocation5 + $0x8] sm:$0xff] %v397_v62  }
 0x1ba   :  { %v314_v1 = vsel %vm303_vm2, %v293_v50, %v489_v63 }
 0x1bb   :  { %v402_v2 = vpack.c.bf16 %v315_v0, %v314_v1 }
 0x1bd   :  { %405 = vst [vmem:[#allocation5 + $0x10] sm:$0xff] %v402_v2  }
 0x1be   :  { %350 = vsyncadd [#allocation4], 64  ;;  %s537_s4 = smov [#allocation5]  }
 0x1bf   :  { %s351_s28 = sshll.u32 %s537_s4, 4  ;;  %s352_s28 = int_to_ptr.vmem [resolvable:$true] %s351_s28 }
 0x1c0   :  { %s510_s1 = scalar_lea.vmem %s352_s28, 320  ;;  %s514_s29 = scalar_lea.vmem %s352_s28, 384 }
 0x1c1   :  { %p511_p5 = scmp.ne.s32.totalorder %s352_s28, %s510_s1  ;;  %p515_p6 = scmp.lt.s32.totalorder %s352_s28, %s352_s28 }
 0x1c2   :  { %p516_p7 = scmp.lt.s32.totalorder %s514_s29, %s510_s1 }
 0x1c4   :  { %p517_p8 = por %p516_p7, %p515_p6 }
 0x1c6   :  { %p518_p9 = pnand %p517_p8, %p511_p5 }
 0x1c8   :  { %521 = shalt.err (!%p518_p9)
}
 0x1c9   :  { %s538_s30 = smov 64   ;;  %s539_s6 = smov 4  }
 0x1ca   :  { %357 = dma.vmem_to_hbm [thread:$0]  %s352_s28, 320, %s641_s5, [#allocation4], %s538_s30, %s538_s30, %s539_s6  }
 0x1cb   :  { %532 = dma.done.wait [#allocation4], 384  }
 0x1cc   :  { %533 = vsyncadd [#allocation4], 4294966912 }
 0x1cd   :  { %361 = vsyncpa [#allocation3], 1 }
 0x1ce   :  { %362 = vsyncpa [#allocation4], 1 }

</bundles_post_ra>
